<compile_context>
chip_gen: v7x
topology: tpu7x:2x2x1
jax: 0.10.0
libtpu: 0.0.40
codegen_flags: <defaults>
</compile_context>

<pallas_src>
import jax
import jax.numpy as jnp
from jax.experimental import pallas as pl
from jax.experimental.pallas import tpu as pltpu


def _marginilized_loss_kernel(a_ref, p_ref, n_ref, o_ref):
    # Upcast in vregs; DMA/VMEM input buffers stay in the source dtype
    # (bf16-friendly).  f32 accumulation is mandatory on v5e (no bf16 VPU).
    a = a_ref[...].astype(jnp.float32)
    p = p_ref[...].astype(jnp.float32)
    n = n_ref[...].astype(jnp.float32)

    dp = a - p
    dn = a - n
    # Fused single reduction: sum(dp^2) - sum(dn^2) == sum(dp^2 - dn^2).
    d = dp * dp - dn * dn
    res = jnp.sum(d, axis=-1, keepdims=True) + 1.0      # [tile_r, 1]
    o_ref[...] = jnp.maximum(res, 0.0).astype(o_ref.dtype)


def _round_up(x, m):
    return ((x + m - 1) // m) * m


def _choose_tile_r(num_rows, dim, itemsize):
    """Byte-based row tile: ~4 MiB of input bytes/step, clipped by VMEM budget."""
    dim_pad = _round_up(max(dim, 1), 128)        # lane padding of (8,128) VMEM tiling
    per_row_bytes = 3 * dim_pad * itemsize       # 3 inputs, one buffer, one row

    # 3 inputs x 2 pipeline buffers must fit ~12 MiB: safe on v5e/v6e/v7x and
    # leaves headroom under the 32 MiB scoped limit for the fused f32 temps.
    vmem_budget = 12 * 1024 * 1024
    cap = max(8, vmem_budget // (2 * per_row_bytes))

    # Target >= ~4 MiB of input DMA per grid step to amortize ~0.35us overhead.
    target = max(8, (4 * 1024 * 1024) // per_row_bytes)

    tile_r = min(cap, target)
    if num_rows <= tile_r:
        return num_rows                          # single block == full array dims (always legal)
    if tile_r >= 128:
        return (tile_r // 128) * 128             # keep sublane tiling clean
    return max(8, (tile_r // 8) * 8)


def marginilized_loss(x):
    """x: list of [ref, batch, dim] arrays; first n-1 are positives, last is negative.

    Matches PyTorch MarginilizedLoss.forward (only x[0], x[1], x[-1] are used).
    Returns [ref, batch] float32 (output is always f32 even for bf16/f16 inputs).
    """
    anchor, positive, negative = x[0], x[1], x[-1]
    ref, batch, dim = anchor.shape
    num_rows = ref * batch

    a2 = anchor.reshape(num_rows, dim)
    p2 = positive.reshape(num_rows, dim)
    n2 = negative.reshape(num_rows, dim)

    itemsize = jnp.dtype(anchor.dtype).itemsize
    tile_r = _choose_tile_r(num_rows, dim, itemsize)
    num_tiles = pl.cdiv(num_rows, tile_r)

    out = pl.pallas_call(
        _marginilized_loss_kernel,
        out_shape=jax.ShapeDtypeStruct((num_rows, 1), jnp.float32),
        grid_spec=pltpu.PrefetchScalarGridSpec(
            num_scalar_prefetch=0,
            grid=(num_tiles,),
            in_specs=[
                pl.BlockSpec((tile_r, dim), lambda i: (i, 0)),
                pl.BlockSpec((tile_r, dim), lambda i: (i, 0)),
                pl.BlockSpec((tile_r, dim), lambda i: (i, 0)),
            ],
            # Plain column output block; Pallas handles the partial last block
            # (out-of-bounds rows are dropped on writeback), so no padded
            # output and no wrapper slice copy.
            out_specs=pl.BlockSpec((tile_r, 1), lambda i: (i, 0)),
        ),
        compiler_params=pltpu.CompilerParams(
            dimension_semantics=("parallel",),      # v7x: shard row grid over 2 TCs
            vmem_limit_bytes=32 * 1024 * 1024,      # raise v5e's 16 MiB scoped default
        ),
        cost_estimate=pl.CostEstimate(
            flops=6 * num_rows * dim,
            transcendentals=0,
            bytes_accessed=3 * num_rows * dim * itemsize + num_rows * 4,
        ),
    )(a2, p2, n2)

    return out.reshape(ref, batch)


def _reference(x):
    a, p, n = x[0], x[1], x[-1]
    intra = jnp.sum((a - p) ** 2, axis=-1)
    inter = jnp.sum((a - n) ** 2, axis=-1)
    return jnp.maximum(intra - inter + 1.0, 0.0)


if __name__ == "__main__":
    key = jax.random.PRNGKey(0)
    ref, batch, dim = 2, 8, 32
    k0, k1, k2 = jax.random.split(key, 3)
    anchor = jax.random.normal(k0, (ref, batch, dim), dtype=jnp.float32)
    positive = jax.random.normal(k1, (ref, batch, dim), dtype=jnp.float32)
    negative = jax.random.normal(k2, (ref, batch, dim), dtype=jnp.float32)

    x = [anchor, positive, negative]

    out = jax.block_until_ready(marginilized_loss(x))
    expected = _reference(x)

    assert out.shape == (ref, batch), out.shape
    # Note: fused reduction changes f32 summation order vs. the reference;
    # differences are at rounding level, within this tolerance.
    assert jnp.allclose(out, expected, atol=1e-5, rtol=1e-5), (out, expected)

    print("KERNEL_OK")
</pallas_src>

<mosaic_0001>
module attributes {stable_mosaic.version = 11 : i64} {
  func.func @_marginilized_loss_kernel(%arg0: i32, %arg1: memref<16x32xf32, #tpu.memory_space<vmem>>, %arg2: memref<16x32xf32, #tpu.memory_space<vmem>>, %arg3: memref<16x32xf32, #tpu.memory_space<vmem>>, %arg4: memref<16x1xf32, #tpu.memory_space<vmem>>) attributes {dimension_semantics = [#tpu.dimension_semantics<parallel>], iteration_bounds = array<i64: 1>, scalar_prefetch = 0 : i64, scratch_operands = 0 : i64, tpu.core_type = #tpu.core_type<tc>, window_params = [{transform_indices = @transform_0, window_bounds = array<i64: 16, 32>}, {transform_indices = @transform_1, window_bounds = array<i64: 16, 32>}, {transform_indices = @transform_2, window_bounds = array<i64: 16, 32>}, {transform_indices = @transform_3, window_bounds = array<i64: 16, 1>}]} {
    %c0 = arith.constant 0 : index
    %c0_0 = arith.constant 0 : index
    %0 = vector.load %arg1[%c0, %c0_0] : memref<16x32xf32, #tpu.memory_space<vmem>>, vector<16x32xf32>
    %c0_1 = arith.constant 0 : index
    %c0_2 = arith.constant 0 : index
    %1 = vector.load %arg2[%c0_1, %c0_2] : memref<16x32xf32, #tpu.memory_space<vmem>>, vector<16x32xf32>
    %c0_3 = arith.constant 0 : index
    %c0_4 = arith.constant 0 : index
    %2 = vector.load %arg3[%c0_3, %c0_4] : memref<16x32xf32, #tpu.memory_space<vmem>>, vector<16x32xf32>
    %3 = arith.subf %0, %1 : vector<16x32xf32>
    %4 = arith.subf %0, %2 : vector<16x32xf32>
    %5 = arith.mulf %3, %3 : vector<16x32xf32>
    %6 = arith.mulf %4, %4 : vector<16x32xf32>
    %7 = arith.subf %5, %6 : vector<16x32xf32>
    %cst = arith.constant dense<0.000000e+00> : vector<16xf32>
    %8 = vector.multi_reduction <add>, %7, %cst [1] : vector<16x32xf32> to vector<16xf32>
    %9 = vector.shape_cast %8 : vector<16xf32> to vector<16x1xf32>
    %cst_5 = arith.constant 1.000000e+00 : f32
    %10 = vector.broadcast %cst_5 : f32 to vector<16x1xf32>
    %11 = arith.addf %9, %10 : vector<16x1xf32>
    %cst_6 = arith.constant 0.000000e+00 : f32
    %12 = vector.broadcast %cst_6 : f32 to vector<16x1xf32>
    %13 = arith.maximumf %11, %12 : vector<16x1xf32>
    %c0_7 = arith.constant 0 : index
    %c0_8 = arith.constant 0 : index
    %14 = vector.load %arg4[%c0_7, %c0_8] : memref<16x1xf32, #tpu.memory_space<vmem>>, vector<16x1xf32>
    tpu.vector_store %arg4[%c0_7, %c0_8], %13 {strides = array<i32>} : memref<16x1xf32, #tpu.memory_space<vmem>>, vector<16x1xf32>,
    return
  }
  func.func @transform_0(%arg0: i32) -> (i32, i32) {
    %c0_i32 = arith.constant 0 : i32
    %c0_i32_0 = arith.constant 0 : i32
    return %arg0, %c0_i32 : i32, i32
  }
  func.func @transform_1(%arg0: i32) -> (i32, i32) {
    %c0_i32 = arith.constant 0 : i32
    %c0_i32_0 = arith.constant 0 : i32
    return %arg0, %c0_i32 : i32, i32
  }
  func.func @transform_2(%arg0: i32) -> (i32, i32) {
    %c0_i32 = arith.constant 0 : i32
    %c0_i32_0 = arith.constant 0 : i32
    return %arg0, %c0_i32 : i32, i32
  }
  func.func @transform_3(%arg0: i32) -> (i32, i32) {
    %c0_i32 = arith.constant 0 : i32
    %c0_i32_0 = arith.constant 0 : i32
    return %arg0, %c0_i32 : i32, i32
  }
}

</mosaic_0001>

<bundles_post_ra>
// kernel: tpu_custom_call.1
= control target key start
LH: loop header
LB: loop body
LE: loop exit
PB: predicated region body
PF: predicated region fallthrough
CT: control target
= control target key end

     0   :  { %8 = vsyncpa [#allocation3], 0  ;;  %s249_s0 = inlined_call_operand.hbm [shape: f32[16,32], index: 0, kind: input, shape index: {}]   ;;  %s250_s1 = inlined_call_operand.hbm [shape: f32[16,32], index: 1, kind: input, shape index: {}]   ;;  %s251_s2 = inlined_call_operand.hbm [shape: f32[16,32], index: 2, kind: input, shape index: {}]   ;;  %s252_s3 = inlined_call_operand.vmem [shape: f32[16,1], index: 3, kind: output, shape index: {}]  }
   0x1   :  { %9 = vsyncpa [#allocation5], 0  ;;  %s166_s12 = smov [#allocation4]   ;;  %s167_s14 = smov [#allocation2]  }
   0x2   :  { %s27_s13 = sshll.u32 %s166_s12, 4  ;;  %s15_s15 = sshll.u32 %s167_s14, 4  ;;  %s28_s13 = int_to_ptr.vmem [resolvable:$true] %s27_s13  ;;  %s191_s15 = int_to_ptr.vmem [resolvable:$true] %s15_s15 }
   0x3   :  { %s96_s18 = scalar_lea.hbm %s250_s1, 256 }
   0x4   :  { %p97_p0 = scmp.ne.s32.totalorder %s250_s1, %s96_s18  ;;  %p100_p1 = scmp.lt.u32.totalorder %s96_s18, %s250_s1 }
   0x6   :  { %p102_p2 = pnand %p100_p1, %p97_p0 }
   0x8   :  { %105 = shalt.err (!%p102_p2)
}
   0x9   :  { %s106_s23 = scalar_lea.vmem %s28_s13, 256  ;;  %p111_p4 = scmp.lt.s32.totalorder %s28_s13, %s28_s13 }
   0xa   :  { %p107_p3 = scmp.ne.s32.totalorder %s28_s13, %s106_s23  ;;  %p112_p5 = scmp.lt.s32.totalorder %s106_s23, %s106_s23 }
   0xc   :  { %p113_p6 = por %p112_p5, %p111_p4 }
   0xe   :  { %p114_p7 = pnand %p113_p6, %p107_p3 }
  0x10   :  { %117 = shalt.err (!%p114_p7)
}
  0x11   :  { %s168_s24 = smov 128   ;;  %s169_s25 = smov 8  }
  0x12   :  { %33 = dma.hbm_to_vmem [thread:$0]  %s250_s1, 256, %s28_s13, [#allocation5], %s168_s24, %s168_s24, %s169_s25  }
  0x13   :  { %s118_s30 = scalar_lea.hbm %s249_s0, 256 }
  0x14   :  { %p119_p8 = scmp.ne.s32.totalorder %s249_s0, %s118_s30  ;;  %p122_p9 = scmp.lt.u32.totalorder %s118_s30, %s249_s0 }
  0x16   :  { %p124_p10 = pnand %p122_p9, %p119_p8 }
  0x18   :  { %127 = shalt.err (!%p124_p10)
}
  0x19   :  { %s128_s8 = scalar_lea.vmem %s191_s15, 256  ;;  %p133_p12 = scmp.lt.s32.totalorder %s191_s15, %s191_s15 }
  0x1a   :  { %p129_p11 = scmp.ne.s32.totalorder %s191_s15, %s128_s8  ;;  %p134_p13 = scmp.lt.s32.totalorder %s128_s8, %s128_s8 }
  0x1c   :  { %p135_p0 = por %p134_p13, %p133_p12 }
  0x1e   :  { %p136_p1 = pnand %p135_p0, %p129_p11 }
  0x20   :  { %139 = shalt.err (!%p136_p1)
}
  0x21   :  { %21 = dma.hbm_to_vmem [thread:$0]  %s249_s0, 256, %s191_s15, [#allocation3], %s168_s24, %s168_s24, %s169_s25  }
  0x22   :  { %s170_s10 = smov [#allocation6]   ;;  %s140_s14 = scalar_lea.hbm %s251_s2, 256 }
  0x23   :  { %s39_s11 = sshll.u32 %s170_s10, 4  ;;  %p141_p2 = scmp.ne.s32.totalorder %s251_s2, %s140_s14  ;;  %s40_s11 = int_to_ptr.vmem [resolvable:$true] %s39_s11 }
  0x24   :  { %p144_p3 = scmp.lt.u32.totalorder %s140_s14, %s251_s2 }
  0x26   :  { %p146_p4 = pnand %p144_p3, %p141_p2 }
  0x28   :  { %149 = shalt.err (!%p146_p4)
}
  0x29   :  { %s150_s20 = scalar_lea.vmem %s40_s11, 256  ;;  %p155_p6 = scmp.lt.s32.totalorder %s40_s11, %s40_s11 }
  0x2a   :  { %p151_p5 = scmp.ne.s32.totalorder %s40_s11, %s150_s20  ;;  %p156_p7 = scmp.lt.s32.totalorder %s150_s20, %s150_s20 }
  0x2c   :  { %p157_p8 = por %p156_p7, %p155_p6 }
  0x2e   :  { %p158_p9 = pnand %p157_p8, %p151_p5 }
  0x30   :  { %161 = shalt.err (!%p158_p9)
}
  0x31   :  { %45 = dma.hbm_to_vmem [thread:$0]  %s251_s2, 256, %s40_s11, [#allocation5], %s168_s24, %s168_s24, %s169_s25  }
  0x32   :  { %162 = dma.done.wait [#allocation3], 256  }
  0x33   :  { %163 = vsyncadd [#allocation3], 4294967040 }
  0x34   :  { %164 = dma.done.wait [#allocation5], 512  }
  0x35   :  { %165 = vsyncadd [#allocation5], 4294966784  ;;  %v55_v0 = vld [vmem:[#allocation2] sm:$0xff]  ;;  %v57_v1 = vld [vmem:[#allocation4] sm:$0xff]  ;;  %vm71_vm0 = vcmask 261120   ;;  %vm82_vm1 = vcmask 7168  }
  0x36   :  { %v59_v2 = vld [vmem:[#allocation6] sm:$0xff]  ;;  %v61_v3 = vsub.f32 %v55_v0, %v57_v1  ;;  %v56_v5 = vld [vmem:[#allocation2 + $0x8] sm:$0xff]  ;;  %v58_v6 = vld [vmem:[#allocation4 + $0x8] sm:$0xff] }
  0x37   :  { %v63_v4 = vsub.f32 %v55_v0, %v59_v2  ;;  %v60_v7 = vld [vmem:[#allocation6 + $0x8] sm:$0xff]  ;;  %v62_v8 = vsub.f32 %v56_v5, %v58_v6 }
  0x38   :  { %v64_v9 = vsub.f32 %v56_v5, %v60_v7  ;;  %v65_v10 = vmul.f32 %v61_v3, %v61_v3 }
  0x39   :  { %v67_v11 = vmul.f32 %v63_v4, %v63_v4  ;;  %v66_v12 = vmul.f32 %v62_v8, %v62_v8 }
  0x3a   :  { %v68_v13 = vmul.f32 %v64_v9, %v64_v9 }
  0x3b   :  { %v69_v14 = vsub.f32 %v65_v10, %v67_v11 }
  0x3c   :  { %v70_v15 = vsub.f32 %v66_v12, %v68_v13 }
  0x3d   :  { %v72_v16 = vsel %vm71_vm0, %v69_v14, 0.0 }
  0x3e   :  { %73 = vadd.xlane.f32.xlu0 %v72_v16  ;;  %v75_v17 = vsel %vm71_vm0, %v70_v15, 0.0 }
  0x42   :  { %76 = vadd.xlane.f32.xlu0 %v75_v17 }
  0xcb   :  { %v74_v18 = vpop.xlane.xlu0 %73 }
  0xcc   :  { %v78_v19 = vadd.f32 1.0, %v74_v18 }
  0xce   :  { %v80_v20 = vmax.f32 %v78_v19, 0.0 }
  0xcf   :  { %v77_v21 = vpop.xlane.xlu0 %76 }
  0xd0   :  { %83 = vst.msk [vmem:[%s252_s3] sm:$0xff] %vm82_vm1, %v80_v20  ;;  %v79_v22 = vadd.f32 1.0, %v77_v21 }
  0xd2   :  { %v81_v23 = vmax.f32 %v79_v22, 0.0 }
  0xd4   :  { %84 = vst.msk [vmem:[%s252_s3 + $0x8] sm:$0xff] %vm82_vm1, %v81_v23 }
  0xd5   :  { %89 = vsyncpa [#allocation3], 1 }
  0xd6   :  { %90 = vsyncpa [#allocation5], 1 }

</bundles_post_ra>
